<compile_context>
chip_gen: v5e
topology: v5e:2x2
jax: 0.10.0
libtpu: 0.0.40
codegen_flags: <defaults>
</compile_context>

<pallas_src>
import functools

import jax
import jax.numpy as jnp
from jax.experimental import pallas as pl
from jax.experimental.pallas import tpu as pltpu


def _int_pow(x, gamma):
    """x ** gamma, unrolled into VPU multiplies when gamma is a small integer."""
    g = float(gamma)
    if g.is_integer() and 0.0 <= g <= 8.0:
        gi = int(g)
        if gi == 0:
            return jnp.ones_like(x)
        out = x
        for _ in range(gi - 1):
            out = out * x
        return out
    return jnp.power(x, g)  # general float gamma: EUP exp/log fallback


def _reduced_focal_loss_kernel(logits_ref, targets_ref, out_ref, *,
                               gamma, alpha, cutoff, norm, chunk, mask_invalid):
    C, TN = logits_ref.shape            # (C, tile_n) lane-dense block
    n_chunks = TN // chunk
    inv_cut = 1.0 / float(cutoff)

    # One small (C, chunk) class iota, hoisted out of the chunk loop.
    class_iota = jax.lax.broadcasted_iota(jnp.int32, (C, chunk), 0)

    def chunk_body(c, acc):
        off = pl.multiple_of(c * chunk, chunk)
        x = logits_ref[:, pl.ds(off, chunk)]        # (C, chunk) f32
        t = targets_ref[:, pl.ds(off, chunk)]       # (1, chunk) i32

        if norm == "Sigmoid":
            # log p = x - (max(x,0) + log1p(exp(-|x|))),  log(1-p) = -(...)
            m = jnp.maximum(x, 0.0)
            sp = jnp.log1p(jnp.exp(-jnp.abs(x)))
            ms = m + sp
            log_p = x - ms
            log_1mp = -ms
            p = jnp.exp(log_p)
        elif norm == "Softmax":
            x_max = jnp.max(x, axis=0, keepdims=True)     # class axis = sublanes
            xs = x - x_max
            ex = jnp.exp(xs)
            denom = jnp.sum(ex, axis=0, keepdims=True)
            p = ex * (1.0 / denom)
            log_p = xs - jnp.log(denom)                    # logsumexp form
            log_1mp = jnp.log1p(-p)
        else:
            raise ValueError("norm must be Sigmoid or Softmax")

        term1coef = jnp.where(p < cutoff, 1.0, _int_pow((1.0 - p) * inv_cut, gamma))
        term2coef = jnp.where(p > 1.0 - cutoff, 1.0, _int_pow(p * inv_cut, gamma))
        term1 = term1coef * log_p
        term2 = term2coef * log_1mp

        neg = (alpha - 1.0) * term2
        if mask_invalid:
            # padded anchor columns carry target = -1 (Softmax padding only)
            neg = jnp.where(t >= 0, neg, 0.0)
        loss = jnp.where(t == class_iota, (-alpha) * term1, neg)   # (C, chunk)

        # Fold the chunk's lanes into the (C, 128) accumulator (pure VPU adds).
        part = loss[:, 0:128]
        for j in range(1, chunk // 128):
            part = part + loss[:, j * 128:(j + 1) * 128]
        return acc + part

    acc = jax.lax.fori_loop(0, n_chunks, chunk_body,
                            jnp.zeros((C, 128), jnp.float32), unroll=2)
    out_ref[...] = acc


def sigmoid_reduced_focal_loss_sum(logits, targets, *, gamma, alpha, cutoff,
                                   norm="Sigmoid", tile_n=65536, chunk=512):
    """Pallas equivalent of SigmoidReducedFocalLoss.forward -> scalar sum."""
    N, C = logits.shape

    chunk = max(128, (int(chunk) // 128) * 128)
    tile_n = max(chunk, (int(tile_n) // chunk) * chunk)
    n_round = pl.cdiv(N, chunk) * chunk
    tile_n = min(tile_n, n_round)
    # Keep >= 2 grid steps when possible so the "parallel" grid axis can shard
    # across v7x's two TensorCores (no cost on single-TC v5e/v6e).
    if n_round >= 2 * chunk:
        tile_n = min(tile_n, pl.cdiv(n_round, 2 * chunk) * chunk)
    n_tiles = pl.cdiv(N, tile_n)
    n_pad = n_tiles * tile_n
    pad = n_pad - N

    # TODO(synk): producing logits upstream in (C, N) layout would remove this
    # transpose+pad, which is one extra HBM read+write of logits before the kernel.
    logits_t = jnp.transpose(logits.astype(jnp.float32))            # (C, N)
    targets_i = targets.astype(jnp.int32)
    mask_invalid = False
    if pad:
        if norm == "Sigmoid":
            # Very negative padded logit -> log(1-p) == 0, term2coef == 0, and
            # target = -1 never matches a class, so padded loss is exactly 0.
            pad_val = -1e4
        else:
            pad_val = 0.0
            mask_invalid = True   # Softmax padding must be masked via target < 0
        logits_t = jnp.pad(logits_t, ((0, 0), (0, pad)), constant_values=pad_val)
        targets_i = jnp.pad(targets_i, (0, pad), constant_values=-1)
    targets_row = targets_i.reshape(1, n_pad)

    kernel = functools.partial(
        _reduced_focal_loss_kernel,
        gamma=float(gamma), alpha=float(alpha), cutoff=float(cutoff),
        norm=norm, chunk=chunk, mask_invalid=mask_invalid)

    partials = pl.pallas_call(
        kernel,
        out_shape=jax.ShapeDtypeStruct((C, n_tiles * 128), jnp.float32),
        grid_spec=pltpu.PrefetchScalarGridSpec(
            num_scalar_prefetch=0,
            grid=(n_tiles,),
            in_specs=[
                pl.BlockSpec((C, tile_n), lambda i: (0, i)),
                pl.BlockSpec((1, tile_n), lambda i: (0, i)),
            ],
            out_specs=pl.BlockSpec((C, 128), lambda i: (0, i)),
        ),
        compiler_params=pltpu.CompilerParams(
            dimension_semantics=("parallel",)),
    )(logits_t, targets_row)

    # Tiny final reduction over per-tile lane-dense partial sums.
    return jnp.sum(partials)


def _reference(logits, targets, gamma, alpha, cutoff, norm):
    # Pure-JAX reference mirroring the PyTorch code exactly.
    num_classes = logits.shape[1]
    class_range = jnp.arange(0, num_classes, dtype=jnp.int32)[None, :]
    t = targets.astype(jnp.int32)[:, None]
    if norm == "Sigmoid":
        p = jax.nn.sigmoid(logits)
    else:
        p = jax.nn.softmax(logits, axis=1)
    term1coef = jnp.where(p < cutoff, 1.0, ((1.0 - p) / cutoff) ** gamma)
    term2coef = jnp.where(p > 1.0 - cutoff, 1.0, (p / cutoff) ** gamma)
    term1 = term1coef * jnp.log(p)
    term2 = term2coef * jnp.log(1.0 - p)
    pos = (t == class_range).astype(jnp.float32)
    loss = -pos * term1 * alpha - (1.0 - pos) * term2 * (1.0 - alpha)
    return loss.sum()


if __name__ == "__main__":
    # Module hyperparameters (deterministic, in-script).
    gamma, alpha, cutoff = 2.0, 0.25, 0.5

    key = jax.random.PRNGKey(0)
    k1, k2 = jax.random.split(key)
    N, C = 640, 8                       # anchors x num_classes (small demo)
    logits = jax.random.normal(k1, (N, C), dtype=jnp.float32)
    targets = jax.random.randint(k2, (N,), 0, C, dtype=jnp.int32)

    # Small tile/chunk to exercise multiple grid steps, multiple chunks per
    # tile, and tail padding (640 is not a multiple of the tile).
    out_sig = sigmoid_reduced_focal_loss_sum(
        logits, targets, gamma=gamma, alpha=alpha, cutoff=cutoff,
        norm="Sigmoid", tile_n=512, chunk=256)
    out_sig = jax.block_until_ready(out_sig)
    ref_sig = _reference(logits, targets, gamma, alpha, cutoff, "Sigmoid")
    assert jnp.allclose(out_sig, ref_sig, rtol=1e-5, atol=1e-3), (out_sig, ref_sig)

    # Softmax path (exercises the masked-padding branch).
    out_sm = sigmoid_reduced_focal_loss_sum(
        logits, targets, gamma=gamma, alpha=alpha, cutoff=cutoff,
        norm="Softmax", tile_n=512, chunk=256)
    out_sm = jax.block_until_ready(out_sm)
    ref_sm = _reference(logits, targets, gamma, alpha, cutoff, "Softmax")
    assert jnp.allclose(out_sm, ref_sm, rtol=1e-5, atol=1e-3), (out_sm, ref_sm)

    print("KERNEL_OK")
</pallas_src>

<mosaic_0001>
module attributes {stable_mosaic.version = 11 : i64} {
  func.func @_reduced_focal_loss_kernel(%arg0: i32, %arg1: memref<8x512xf32, #tpu.memory_space<vmem>>, %arg2: memref<1x512xi32, #tpu.memory_space<vmem>>, %arg3: memref<8x128xf32, #tpu.memory_space<vmem>>) attributes {dimension_semantics = [#tpu.dimension_semantics<parallel>], iteration_bounds = array<i64: 2>, scalar_prefetch = 0 : i64, scratch_operands = 0 : i64, tpu.core_type = #tpu.core_type<tc>, window_params = [{transform_indices = @transform_0, window_bounds = array<i64: 8, 512>}, {transform_indices = @transform_1, window_bounds = array<i64: 1, 512>}, {transform_indices = @transform_2, window_bounds = array<i64: 8, 128>}]} {
    %0 = tpu.iota {dimensions = array<i32: 0>} : vector<8x256xi32>
    %cst = arith.constant 0.000000e+00 : f32
    %1 = vector.broadcast %cst : f32 to vector<8x128xf32>
    %c0_i32 = arith.constant 0 : i32
    %c256_i32 = arith.constant 256 : i32
    %2 = arith.muli %c0_i32, %c256_i32 : i32
    %3 = tpu.assume_multiple %2, 256 : i32
    %c0 = arith.constant 0 : index
    %4 = arith.index_cast %3 : i32 to index
    %5 = vector.load %arg1[%c0, %4] : memref<8x512xf32, #tpu.memory_space<vmem>>, vector<8x256xf32>
    %c0_0 = arith.constant 0 : index
    %6 = arith.index_cast %3 : i32 to index
    %7 = vector.load %arg2[%c0_0, %6] : memref<1x512xi32, #tpu.memory_space<vmem>>, vector<1x256xi32>
    %cst_1 = arith.constant 0.000000e+00 : f32
    %8 = vector.broadcast %cst_1 : f32 to vector<8x256xf32>
    %9 = arith.maximumf %5, %8 : vector<8x256xf32>
    %10 = math.absf %5 : vector<8x256xf32>
    %cst_2 = arith.constant 0.000000e+00 : f32
    %11 = vector.broadcast %cst_2 : f32 to vector<8x256xf32>
    %12 = arith.subf %11, %10 : vector<8x256xf32>
    %13 = math.exp %12 : vector<8x256xf32>
    %14 = math.log1p %13 : vector<8x256xf32>
    %15 = arith.addf %9, %14 : vector<8x256xf32>
    %16 = arith.subf %5, %15 : vector<8x256xf32>
    %cst_3 = arith.constant 0.000000e+00 : f32
    %17 = vector.broadcast %cst_3 : f32 to vector<8x256xf32>
    %18 = arith.subf %17, %15 : vector<8x256xf32>
    %19 = math.exp %16 : vector<8x256xf32>
    %cst_4 = arith.constant 5.000000e-01 : f32
    %20 = vector.broadcast %cst_4 : f32 to vector<8x256xf32>
    %21 = arith.cmpf olt, %19, %20 : vector<8x256xf32>
    %cst_5 = arith.constant 1.000000e+00 : f32
    %22 = vector.broadcast %cst_5 : f32 to vector<8x256xf32>
    %23 = arith.subf %22, %19 : vector<8x256xf32>
    %cst_6 = arith.constant 2.000000e+00 : f32
    %24 = vector.broadcast %cst_6 : f32 to vector<8x256xf32>
    %25 = arith.mulf %23, %24 : vector<8x256xf32>
    %26 = arith.mulf %25, %25 : vector<8x256xf32>
    %cst_7 = arith.constant 1.000000e+00 : f32
    %27 = vector.broadcast %cst_7 : f32 to vector<8x256xf32>
    %28 = arith.select %21, %27, %26 : vector<8x256xi1>, vector<8x256xf32>
    %cst_8 = arith.constant 5.000000e-01 : f32
    %29 = vector.broadcast %cst_8 : f32 to vector<8x256xf32>
    %30 = arith.cmpf ogt, %19, %29 : vector<8x256xf32>
    %cst_9 = arith.constant 2.000000e+00 : f32
    %31 = vector.broadcast %cst_9 : f32 to vector<8x256xf32>
    %32 = arith.mulf %19, %31 : vector<8x256xf32>
    %33 = arith.mulf %32, %32 : vector<8x256xf32>
    %cst_10 = arith.constant 1.000000e+00 : f32
    %34 = vector.broadcast %cst_10 : f32 to vector<8x256xf32>
    %35 = arith.select %30, %34, %33 : vector<8x256xi1>, vector<8x256xf32>
    %36 = arith.mulf %28, %16 : vector<8x256xf32>
    %37 = arith.mulf %35, %18 : vector<8x256xf32>
    %cst_11 = arith.constant -7.500000e-01 : f32
    %38 = vector.broadcast %cst_11 : f32 to vector<8x256xf32>
    %39 = arith.mulf %38, %37 : vector<8x256xf32>
    %40 = vector.broadcast %7 : vector<1x256xi32> to vector<8x256xi32>
    %41 = arith.cmpi eq, %40, %0 : vector<8x256xi32>
    %cst_12 = arith.constant -2.500000e-01 : f32
    %42 = vector.broadcast %cst_12 : f32 to vector<8x256xf32>
    %43 = arith.mulf %42, %36 : vector<8x256xf32>
    %44 = arith.select %41, %43, %39 : vector<8x256xi1>, vector<8x256xf32>
    %45 = vector.extract_strided_slice %44 {offsets = [0, 0], sizes = [8, 128], strides = [1, 1]} : vector<8x256xf32> to vector<8x128xf32>
    %46 = vector.extract_strided_slice %44 {offsets = [0, 128], sizes = [8, 128], strides = [1, 1]} : vector<8x256xf32> to vector<8x128xf32>
    %47 = arith.addf %45, %46 : vector<8x128xf32>
    %48 = arith.addf %1, %47 : vector<8x128xf32>
    %c1_i32 = arith.constant 1 : i32
    %c256_i32_13 = arith.constant 256 : i32
    %49 = arith.muli %c1_i32, %c256_i32_13 : i32
    %50 = tpu.assume_multiple %49, 256 : i32
    %c0_14 = arith.constant 0 : index
    %51 = arith.index_cast %50 : i32 to index
    %52 = vector.load %arg1[%c0_14, %51] : memref<8x512xf32, #tpu.memory_space<vmem>>, vector<8x256xf32>
    %c0_15 = arith.constant 0 : index
    %53 = arith.index_cast %50 : i32 to index
    %54 = vector.load %arg2[%c0_15, %53] : memref<1x512xi32, #tpu.memory_space<vmem>>, vector<1x256xi32>
    %cst_16 = arith.constant 0.000000e+00 : f32
    %55 = vector.broadcast %cst_16 : f32 to vector<8x256xf32>
    %56 = arith.maximumf %52, %55 : vector<8x256xf32>
    %57 = math.absf %52 : vector<8x256xf32>
    %cst_17 = arith.constant 0.000000e+00 : f32
    %58 = vector.broadcast %cst_17 : f32 to vector<8x256xf32>
    %59 = arith.subf %58, %57 : vector<8x256xf32>
    %60 = math.exp %59 : vector<8x256xf32>
    %61 = math.log1p %60 : vector<8x256xf32>
    %62 = arith.addf %56, %61 : vector<8x256xf32>
    %63 = arith.subf %52, %62 : vector<8x256xf32>
    %cst_18 = arith.constant 0.000000e+00 : f32
    %64 = vector.broadcast %cst_18 : f32 to vector<8x256xf32>
    %65 = arith.subf %64, %62 : vector<8x256xf32>
    %66 = math.exp %63 : vector<8x256xf32>
    %cst_19 = arith.constant 5.000000e-01 : f32
    %67 = vector.broadcast %cst_19 : f32 to vector<8x256xf32>
    %68 = arith.cmpf olt, %66, %67 : vector<8x256xf32>
    %cst_20 = arith.constant 1.000000e+00 : f32
    %69 = vector.broadcast %cst_20 : f32 to vector<8x256xf32>
    %70 = arith.subf %69, %66 : vector<8x256xf32>
    %cst_21 = arith.constant 2.000000e+00 : f32
    %71 = vector.broadcast %cst_21 : f32 to vector<8x256xf32>
    %72 = arith.mulf %70, %71 : vector<8x256xf32>
    %73 = arith.mulf %72, %72 : vector<8x256xf32>
    %cst_22 = arith.constant 1.000000e+00 : f32
    %74 = vector.broadcast %cst_22 : f32 to vector<8x256xf32>
    %75 = arith.select %68, %74, %73 : vector<8x256xi1>, vector<8x256xf32>
    %cst_23 = arith.constant 5.000000e-01 : f32
    %76 = vector.broadcast %cst_23 : f32 to vector<8x256xf32>
    %77 = arith.cmpf ogt, %66, %76 : vector<8x256xf32>
    %cst_24 = arith.constant 2.000000e+00 : f32
    %78 = vector.broadcast %cst_24 : f32 to vector<8x256xf32>
    %79 = arith.mulf %66, %78 : vector<8x256xf32>
    %80 = arith.mulf %79, %79 : vector<8x256xf32>
    %cst_25 = arith.constant 1.000000e+00 : f32
    %81 = vector.broadcast %cst_25 : f32 to vector<8x256xf32>
    %82 = arith.select %77, %81, %80 : vector<8x256xi1>, vector<8x256xf32>
    %83 = arith.mulf %75, %63 : vector<8x256xf32>
    %84 = arith.mulf %82, %65 : vector<8x256xf32>
    %cst_26 = arith.constant -7.500000e-01 : f32
    %85 = vector.broadcast %cst_26 : f32 to vector<8x256xf32>
    %86 = arith.mulf %85, %84 : vector<8x256xf32>
    %87 = vector.broadcast %54 : vector<1x256xi32> to vector<8x256xi32>
    %88 = arith.cmpi eq, %87, %0 : vector<8x256xi32>
    %cst_27 = arith.constant -2.500000e-01 : f32
    %89 = vector.broadcast %cst_27 : f32 to vector<8x256xf32>
    %90 = arith.mulf %89, %83 : vector<8x256xf32>
    %91 = arith.select %88, %90, %86 : vector<8x256xi1>, vector<8x256xf32>
    %92 = vector.extract_strided_slice %91 {offsets = [0, 0], sizes = [8, 128], strides = [1, 1]} : vector<8x256xf32> to vector<8x128xf32>
    %93 = vector.extract_strided_slice %91 {offsets = [0, 128], sizes = [8, 128], strides = [1, 1]} : vector<8x256xf32> to vector<8x128xf32>
    %94 = arith.addf %92, %93 : vector<8x128xf32>
    %95 = arith.addf %48, %94 : vector<8x128xf32>
    %c2_i32 = arith.constant 2 : i32
    %c0_28 = arith.constant 0 : index
    %c0_29 = arith.constant 0 : index
    %96 = vector.load %arg3[%c0_28, %c0_29] : memref<8x128xf32, #tpu.memory_space<vmem>>, vector<8x128xf32>
    tpu.vector_store %arg3[%c0_28, %c0_29], %95 {strides = array<i32>} : memref<8x128xf32, #tpu.memory_space<vmem>>, vector<8x128xf32>,
    return
  }
  func.func @transform_0(%arg0: i32) -> (i32, i32) {
    %c0_i32 = arith.constant 0 : i32
    %c0_i32_0 = arith.constant 0 : i32
    return %c0_i32, %arg0 : i32, i32
  }
  func.func @transform_1(%arg0: i32) -> (i32, i32) {
    %c0_i32 = arith.constant 0 : i32
    %c0_i32_0 = arith.constant 0 : i32
    return %c0_i32, %arg0 : i32, i32
  }
  func.func @transform_2(%arg0: i32) -> (i32, i32) {
    %c0_i32 = arith.constant 0 : i32
    %c0_i32_0 = arith.constant 0 : i32
    return %c0_i32, %arg0 : i32, i32
  }
}

</mosaic_0001>

<bundles_post_ra>
// kernel: tpu_custom_call.1
= control target key start
LH: loop header
LB: loop body
LE: loop exit
PB: predicated region body
PF: predicated region fallthrough
CT: control target
= control target key end

     0   :  { %7 = vsyncpa [#allocation3], 0  ;;  %s940_s0 = inlined_call_operand.hbm [shape: f32[8,1024], index: 0, kind: input, shape index: {}]   ;;  %s941_s1 = inlined_call_operand.hbm [shape: s32[1,1024], index: 1, kind: input, shape index: {}]   ;;  %s942_s2 = inlined_call_operand.hbm [shape: f32[8,256], index: 2, kind: output, shape index: {}]  }
   0x1   :  { %9 = vsyncpa [#allocation3 + $0x1], 0 }
   0x2   :  { %10 = vsyncpa [#allocation6], 0 }
   0x3   :  { %12 = vsyncpa [#allocation6 + $0x1], 0 }
   0x4   :  { %13 = vsyncpa [#allocation4], 0 }
   0x5   :  { %15 = vsyncpa [#allocation4 + $0x1], 0  ;;  %s709_s9 = smov 0   ;;  %s711_s10 = smov 0  }
   0x6   :  { %s713_s11 = smov 0   ;;  %s715_s12 = smov 0  }
   0x7 LB: > { %s730_s13 = sadd.s32 4294967295, %s692_s12   ;;  %s467_s14 = sadd.s32 4294967294, %s692_s12   ;;  %s692_s12 = sphi %s715_s12, %s957_s12   ;;  %s688_s11 = sphi %s713_s11, %s956_s11   ;;  %s684_s10 = sphi %s711_s10, %s955_s10   ;;  %s680_s9 = sphi %s709_s9, %s954_s9  }
   0x8   : > { %s734_s15 = sadd.s32 1, %s692_s12   ;;  %s28_s16 = sadd.s32 1, %s688_s11 }
   0x9   : > { %s25_s17 = ssub.s32 %s692_s12, %s734_s15  ;;  %p35_p0 = scmp.ne.s32.totalorder %s688_s11, %s684_s10 }
   0xa   : > { %p26_p1 = scmp.eq.s32.totalorder %s25_s17, 0  ;;  %p36_p2 = scmp.eq.s32.totalorder %s692_s12, 0 }
   0xb   : > { %p41_p3 = scmp.ne.s32.totalorder %s684_s10, %s680_s9  ;;  %p42_p4 = scmp.eq.s32.totalorder %s730_s13, 0 }
   0xc   : > { %s746_s18 = scalar_select %p26_p1, %s688_s11, %s28_s16  }
   0xd   : > { %p748_p5 = por %p36_p2, %p35_p0  ;;  %p752_p6 = por %p42_p4, %p41_p3 }
   0xe   : > { %p91_p7 = scmp.eq.s32.totalorder %s730_s13, 1  ;;  %p97_p8 = scmp.eq.s32.totalorder %s467_s14, 1 }
   0xf   : > { %p504_p10 = scmp.lt.s32.totalorder %s692_s12, 2  ;;  %s768_s23 = sand.u32 1, %s688_s11  }
  0x10   : > { %p759_p11 = por %p91_p7, %p35_p0  ;;  %p763_p12 = por %p97_p8, %p41_p3 }
  0x11   : > { %s486_s24 = sshll.u32 %s692_s12, 5  ;;  %s470_s25 = sshll.u32 %s768_s23, 5 }
  0x12   : > { %s126_s28 = scalar_lea.hbm %s940_s0, %s486_s24  ;;  %s121_s30 = scalar_lea.vmem [#allocation2], %s470_s25 }
  0x13   : > { %s128_s29 = sshll.u32 %s126_s28, 4  ;;  %s130_s3 = sshll.u32 %s121_s30, 4  ;;  %s129_s29 = int_to_ptr.hbm [resolvable:$true] %s128_s29  ;;  %s131_s3 = int_to_ptr.vmem [resolvable:$true] %s130_s3 }
  0x14   : > { %p777_p13 = pnand %p504_p10, %p748_p5  ;;  %p475_p0 = scmp.ge.s32.totalorder %s692_s12, 1 }
  0x15   : > { %p154_p1 = scmp.lt.s32.totalorder %s692_s12, 3  ;;  %s473_s5 = sshll.u32 %s768_s23, 2 }
  0x16   : > { %s118_s6 = scalar_lea.sflag [#allocation3], %s768_s23  ;;  %s562_s7 = sshra.s32 %s129_s29, 4  ;;  %s563_s7 = int_to_ptr.hbm [resolvable:$true] %s562_s7 }
  0x17   : > { %s564_s8 = scalar_lea.hbm %s563_s7, 32  ;;  %p566_p3 = pneg %p777_p13 }
  0x18   : > { %p565_p2 = scmp.ne.s32.totalorder %s563_s7, %s564_s8  ;;  %s569_s17 = scalar_lea.hbm %s940_s0, 64 }
  0x19   : > { %p570_p5 = scmp.lt.s32.totalorder %s563_s7, %s940_s0  ;;  %p571_p8 = scmp.lt.s32.totalorder %s569_s17, %s564_s8 }
  0x1a   : > { %p567_p4 = pnand %p566_p3, %p565_p2 }
  0x1b   : > { %p572_p10 = por %p571_p8, %p570_p5 }
  0x1c   : > { %p568_p7 = pneg %p567_p4 }
  0x1e   : > { %p573_p9 = pnand %p572_p10, %p568_p7 }
  0x20   : > { %576 = shalt.err (!%p573_p9)
}
  0x21   : > { %496 = dma.hbm_to_vmem [thread:$0]  (!%p777_p13), %s129_s29, 512, %s131_s3, %s118_s6  }
  0x22   : > { %p802_p2 = pnand %p475_p0, %p154_p1  ;;  %s474_s26 = sshll.u32 %s692_s12, 2 }
  0x23   : > { %s141_s27 = scalar_lea.vmem [#allocation5], %s473_s5  ;;  %s145_s8 = scalar_lea.hbm %s941_s1, %s474_s26 }
  0x24   : > { %s149_s28 = sshll.u32 %s141_s27, 4  ;;  %s147_s14 = sshll.u32 %s145_s8, 4  ;;  %s150_s28 = int_to_ptr.vmem [resolvable:$true] %s149_s28  ;;  %s148_s14 = int_to_ptr.hbm [resolvable:$true] %s147_s14 }
  0x25   : > { %s138_s16 = scalar_lea.sflag [#allocation6], %s768_s23  ;;  %s592_s17 = sshra.s32 %s148_s14, 4  ;;  %s593_s17 = int_to_ptr.hbm [resolvable:$true] %s592_s17 }
  0x26   : > { %s594_s29 = scalar_lea.hbm %s593_s17, 4  ;;  %s599_s5 = scalar_lea.hbm %s941_s1, 8 }
  0x27   : > { %p595_p9 = scmp.ne.s32.totalorder %s593_s17, %s594_s29  ;;  %p600_p4 = scmp.lt.s32.totalorder %s593_s17, %s941_s1 }
  0x28   : > { %p601_p7 = scmp.lt.s32.totalorder %s599_s5, %s594_s29 }
  0x29   : > { %p597_p0 = pnand %p595_p9, %p566_p3 }
  0x2a   : > { %p602_p5 = por %p601_p7, %p600_p4 }
  0x2b   : > { %p598_p1 = pneg %p597_p0 }
  0x2d   : > { %p603_p8 = pnand %p602_p5, %p598_p1 }
  0x2f   : > { %606 = shalt.err (!%p603_p8)
}
  0x30   : > { %499 = dma.hbm_to_vmem [thread:$0]  (!%p777_p13), %s148_s14, 64, %s150_s28, %s138_s16  }
  0x31   : > { %158 = sbr.rel (%p802_p2) target bundleno = 121 (0x79), region = 28  ;;  %s825_s23 = sand.u32 (!%p802_p2), 1, %s684_s10  }
  0x32   : > { %s476_s26 = sshll.u32 (!%p802_p2), %s825_s23, 5  ;;  %s161_s27 = scalar_lea.sflag (!%p802_p2), [#allocation3], %s825_s23 }
  0x33   : > { %s164_s30 = scalar_lea.vmem (!%p802_p2), [#allocation2], %s476_s26 }
  0x36   : > { %667 = dma.done.wait (%p752_p6), %s161_s27, 512  }
  0x37   : > { %669 = vsyncadd (%p752_p6), %s161_s27, 4294966784  ;;  %s477_s4 = sshll.u32 %s825_s23, 2  ;;  %s171_s25 = scalar_lea.sflag [#allocation6], %s825_s23 }
  0x38   : > { %s835_s28 = scalar_lea.vmem [#allocation5], %s477_s4 }
  0x39   : > { %671 = dma.done.wait (%p752_p6), %s171_s25, 64  }
  0x3a   : > { %673 = vsyncadd (%p752_p6), %s171_s25, 4294967232  ;;  %v841_v0 = vld [vmem:[%s164_s30] sm:$0xff]  ;;  %v843_v1 = vld [vmem:[%s164_s30 + $0x8] sm:$0xff]  ;;  %s478_s20 = sshll.u32 %s825_s23, 3  ;;  %s483_s7 = sshll.u32 %s730_s13, 3 }
  0x3b   : > { %v210_v2 = vand.u32 2147483647, %v841_v0  ;;  %v211_v3 = vand.u32 2147483647, %v843_v1  ;;  %v847_v4 = vld [vmem:[%s164_s30 + $0x10] sm:$0xff]  ;;  %v849_v5 = vld [vmem:[%s164_s30 + $0x18] sm:$0xff]  ;;  %s369_s14 = scalar_lea.hbm %s942_s2, %s483_s7 }
  0x3c   : > { %v287_v8 = vand.u32 2147483647, %v847_v4  ;;  %v288_v9 = vand.u32 2147483647, %v849_v5  ;;  %v208_v32 = vmax.f32 %v841_v0, 0.0  ;;  %v209_v33 = vmax.f32 %v843_v1, 0.0 }
  0x3d   : > { %v212_v6 = vsub.f32 0.0, %v210_v2  ;;  %v213_v7 = vsub.f32 0.0, %v211_v3  ;;  %v285_v45 = vmax.f32 %v847_v4, 0.0  ;;  %v286_v53 = vmax.f32 %v849_v5, 0.0  ;;  %s200_s16 = scalar_lea.vmem [#allocation7], %s478_s20  ;;  %s373_s29 = sshll.u32 %s369_s14, 4  ;;  %s374_s29 = int_to_ptr.hbm [resolvable:$true] %s373_s29 }
  0x3e   : > { %v289_v12 = vsub.f32 0.0, %v287_v8  ;;  %v290_v13 = vsub.f32 0.0, %v288_v9  ;;  %v203_v3 = vlaneseq  ;;  %v875_v8 = vld [vmem:[%s835_s28 + $0x2] sm:$0x3]  ;;  %s371_s17 = sshll.u32 %s200_s16, 4  ;;  %s359_s3 = scalar_lea.sflag [#allocation4], %s825_s23  ;;  %s372_s17 = int_to_ptr.vmem [resolvable:$true] %s371_s17 }
  0x3f   : > { %v214_v10 = vmul.f32 1.442695, %v212_v6  ;;  %v216_v11 = vmul.f32 1.442695, %v213_v7  ;;  %s636_s6 = sshra.s32 %s374_s29, 4  ;;  %s642_s26 = scalar_lea.hbm %s942_s2, 16  ;;  %s637_s6 = int_to_ptr.hbm [resolvable:$true] %s636_s6 }
  0x40   : > { %v291_v14 = vmul.f32 1.442695, %v289_v12  ;;  %v293_v15 = vmul.f32 1.442695, %v290_v13  ;;  %v877_v9 = vshrl.u32 %v203_v3, 7  ;;  %s638_s5 = scalar_lea.hbm %s637_s6, 8  ;;  %p643_p10 = scmp.lt.s32.totalorder %s637_s6, %s942_s2 }
  0x41   : > { %538 = vpow2.f32 %v214_v10  ;;  %p639_p6 = scmp.ne.s32.totalorder %s637_s6, %s638_s5  ;;  %p644_p2 = scmp.lt.s32.totalorder %s642_s26, %s638_s5 }
  0x42   : > { %540 = vpow2.f32 %v216_v11 }
  0x43   : > { %542 = vpow2.f32 %v291_v14  ;;  %p640_p13 = pnand %p639_p6, %p759_p11  ;;  %p645_p9 = por %p644_p2, %p643_p10 }
  0x44   : > { %544 = vpow2.f32 %v293_v15 }
  0x45   : > { %p641_p3 = pneg %p640_p13 }
  0x47   : > { %v539_v16 = vpop.eup %538  ;;  %p646_p0 = pnand %p645_p9, %p641_p3 }
  0x48   : > { %v541_v17 = vpop.eup %540  ;;  %v218_v18 = vadd.f32 1.0, %v539_v16  ;;  %v221_v19 = vmul.f32 -0.5, %v539_v16  ;;  %v224_v25 = vand.u32 2147483647, %v539_v16 }
  0x49   : > { %v227_v20 = vadd.f32 1.0, %v541_v17  ;;  %v230_v21 = vmul.f32 -0.5, %v541_v17  ;;  %v543_v22 = vpop.eup %542  ;;  %v233_v29 = vand.u32 2147483647, %v541_v17 }
  0x4a   : > { %546 = vlog2.f32 %v218_v18  ;;  %v545_v23 = vpop.eup %544  ;;  %v222_v24 = vadd.f32 1.0, %v221_v19  ;;  %v295_v27 = vadd.f32 1.0, %v543_v22  ;;  %v298_v28 = vmul.f32 -0.5, %v543_v22 }
  0x4b   : > { %548 = vlog2.f32 %v227_v20  ;;  %v231_v26 = vadd.f32 1.0, %v230_v21  ;;  %v304_v30 = vadd.f32 1.0, %v545_v23  ;;  %v307_v31 = vmul.f32 -0.5, %v545_v23 }
  0x4c   : > { %550 = vlog2.f32 %v295_v27  ;;  %v223_v34 = vmul.f32 %v539_v16, %v222_v24  ;;  %v299_v35 = vadd.f32 1.0, %v298_v28  ;;  %vm225_vm0 = vcmp.lt.f32.partialorder %v224_v25, 0.0004427343 }
  0x4d   : > { %552 = vlog2.f32 %v304_v30  ;;  %v232_v37 = vmul.f32 %v541_v17, %v231_v26  ;;  %v301_v38 = vand.u32 2147483647, %v543_v22  ;;  %v308_v39 = vadd.f32 1.0, %v307_v31 }
  0x4e   : > { %vm234_vm1 = vcmp.lt.f32.partialorder %v233_v29, 0.0004427343  ;;  %v310_v42 = vand.u32 2147483647, %v545_v23  ;;  %v300_v46 = vmul.f32 %v543_v22, %v299_v35 }
  0x4f   : > { %vm302_vm2 = vcmp.lt.f32.partialorder %v301_v38, 0.0004427343  ;;  %v309_v50 = vmul.f32 %v545_v23, %v308_v39 }
  0x50   : > { %v547_v36 = vpop.eup %546  ;;  %vm311_vm3 = vcmp.lt.f32.partialorder %v310_v42, 0.0004427343 }
  0x51   : > { %v549_v40 = vpop.eup %548  ;;  %v220_v41 = vmul.f32 0.6931472, %v547_v36 }
  0x52   : > { %v229_v43 = vmul.f32 0.6931472, %v549_v40  ;;  %v551_v47 = vpop.eup %550 }
  0x53   : > { %v226_v44 = vsel %vm225_vm0, %v223_v34, %v220_v41  ;;  %v553_v51 = vpop.eup %552  ;;  %v297_v54 = vmul.f32 0.6931472, %v551_v47 }
  0x54   : > { %v235_v48 = vsel %vm234_vm1, %v232_v37, %v229_v43  ;;  %v236_v49 = vadd.f32 %v226_v44, %v208_v32  ;;  %v306_v56 = vmul.f32 0.6931472, %v553_v51 }
  0x55   : > { %v237_v52 = vadd.f32 %v235_v48, %v209_v33  ;;  %v303_v58 = vsel %vm302_vm2, %v300_v46, %v297_v54 }
  0x56   : > { %v238_v55 = vsub.f32 %v841_v0, %v236_v49  ;;  %v312_v60 = vsel %vm311_vm3, %v309_v50, %v306_v56  ;;  %v859_v61 = vadd.f32 %v303_v58, %v285_v45  ;;  %v240_v13 = vsub.f32 0.0, %v236_v49 }
  0x57   : > { %v239_v57 = vsub.f32 %v843_v1, %v237_v52  ;;  %v861_v63 = vadd.f32 %v312_v60, %v286_v53  ;;  %v207_v1 = vld [vmem:[%s835_s28] sm:$0x3]  ;;  %v241_v16 = vsub.f32 0.0, %v237_v52 }
  0x58   : > { %v242_v59 = vmul.f32 1.442695, %v238_v55  ;;  %v865_v2 = vsub.f32 %v847_v4, %v859_v61  ;;  %v270_v10 = vperm.slane %v207_v1, 0  ;;  %v271_v11 = vperm.slane %v207_v1, 1 }
  0x59   : > { %v244_v62 = vmul.f32 1.442695, %v239_v57  ;;  %v869_v0 = vsub.f32 %v849_v5, %v861_v63  ;;  %v347_v5 = vperm.slane %v875_v8, 0  ;;  %v317_v22 = vsub.f32 0.0, %v859_v61 }
  0x5a   : > { %554 = vpow2.f32 %v242_v59  ;;  %v319_v6 = vmul.f32 1.442695, %v865_v2  ;;  %vm881_vm6 = vcmp.eq.s32.totalorder %v270_v10, %v877_v9  ;;  %vm887_vm8 = vcmp.eq.s32.totalorder %v271_v11, %v877_v9 }
  0x5b   : > { %556 = vpow2.f32 %v244_v62  ;;  %v321_v7 = vmul.f32 1.442695, %v869_v0  ;;  %v318_v27 = vsub.f32 0.0, %v861_v63  ;;  %vm349_vm14 = vcmp.eq.s32.totalorder %v347_v5, %v877_v9 }
  0x5c   : > { %558 = vpow2.f32 %v319_v6 }
  0x5d   : > { %560 = vpow2.f32 %v321_v7 }
  0x60   : > { %v555_v4 = vpop.eup %554 }
  0x61   : > { %v557_v12 = vpop.eup %556  ;;  %v248_v14 = vsub.f32 1.0, %v555_v4  ;;  %v258_v15 = vmul.f32 2.0, %v555_v4  ;;  %vm256_vm4 = vcmp.gt.f32.partialorder %v555_v4, 0.5  ;;  %vm246_vm7 = vcmp.lt.f32.partialorder %v555_v4, 0.5 }
  0x62   : > { %v249_v17 = vsub.f32 1.0, %v557_v12  ;;  %v259_v18 = vmul.f32 2.0, %v557_v12  ;;  %vm257_vm5 = vcmp.gt.f32.partialorder %v557_v12, 0.5  ;;  %v559_v23 = vpop.eup %558  ;;  %vm247_vm9 = vcmp.lt.f32.partialorder %v557_v12, 0.5 }
  0x63   : > { %v250_v19 = vmul.f32 2.0, %v248_v14  ;;  %v260_v20 = vmul.f32 %v258_v15, %v258_v15  ;;  %v561_v28 = vpop.eup %560  ;;  %v325_v31 = vsub.f32 1.0, %v559_v23  ;;  %vm323_vm10 = vcmp.lt.f32.partialorder %v559_v23, 0.5 }
  0x64   : > { %v251_v24 = vmul.f32 2.0, %v249_v17  ;;  %v261_v25 = vmul.f32 %v259_v18, %v259_v18  ;;  %v326_v37 = vsub.f32 1.0, %v561_v28  ;;  %vm324_vm11 = vcmp.lt.f32.partialorder %v561_v28, 0.5 }
  0x65   : > { %v252_v29 = vmul.f32 %v250_v19, %v250_v19  ;;  %v262_v30 = vsel %vm256_vm4, 1.0, %v260_v20  ;;  %v327_v38 = vmul.f32 2.0, %v325_v31  ;;  %vm333_vm12 = vcmp.gt.f32.partialorder %v559_v23, 0.5 }
  0x66   : > { %v253_v32 = vmul.f32 %v251_v24, %v251_v24  ;;  %v263_v33 = vsel %vm257_vm5, 1.0, %v261_v25  ;;  %v266_v34 = vmul.f32 %v262_v30, %v240_v13  ;;  %v328_v43 = vmul.f32 2.0, %v326_v37 }
  0x67   : > { %v254_v35 = vsel %vm246_vm7, 1.0, %v252_v29  ;;  %v267_v36 = vmul.f32 %v263_v33, %v241_v16  ;;  %v329_v44 = vmul.f32 %v327_v38, %v327_v38  ;;  %v335_v47 = vmul.f32 2.0, %v559_v23 }
  0x68   : > { %v255_v39 = vsel %vm247_vm9, 1.0, %v253_v32  ;;  %v264_v40 = vmul.f32 %v254_v35, %v238_v55  ;;  %v268_v41 = vmul.f32 -0.75, %v266_v34  ;;  %v336_v48 = vmul.f32 2.0, %v561_v28 }
  0x69   : > { %v265_v42 = vmul.f32 %v255_v39, %v239_v57  ;;  %v269_v45 = vmul.f32 -0.75, %v267_v36  ;;  %v330_v50 = vmul.f32 %v328_v43, %v328_v43  ;;  %v331_v51 = vsel %vm323_vm10, 1.0, %v329_v44 }
  0x6a   : > { %v274_v46 = vmul.f32 -0.25, %v264_v40  ;;  %vm334_vm13 = vcmp.gt.f32.partialorder %v561_v28, 0.5  ;;  %v337_v52 = vmul.f32 %v335_v47, %v335_v47  ;;  %v338_v53 = vmul.f32 %v336_v48, %v336_v48 }
  0x6b   : > { %v275_v49 = vmul.f32 -0.25, %v265_v42  ;;  %v341_v54 = vmul.f32 %v331_v51, %v865_v2  ;;  %v348_v55 = vperm.slane %v875_v8, 1  ;;  %v332_v56 = vsel %vm324_vm11, 1.0, %v330_v50 }
  0x6c   : > { %v276_v57 = vsel %vm881_vm6, %v274_v46, %v268_v41  ;;  %v339_v58 = vsel %vm333_vm12, 1.0, %v337_v52  ;;  %v340_v59 = vsel %vm334_vm13, 1.0, %v338_v53  ;;  %v342_v60 = vmul.f32 %v332_v56, %v869_v0 }
  0x6d   : > { %v277_v61 = vsel %vm887_vm8, %v275_v49, %v269_v45  ;;  %v343_v62 = vmul.f32 %v339_v58, %v317_v22  ;;  %v344_v63 = vmul.f32 %v340_v59, %v318_v27  ;;  %v351_v2 = vmul.f32 -0.25, %v341_v54 }
  0x6e   : > { %vm350_vm15 = vcmp.eq.s32.totalorder %v348_v55, %v877_v9  ;;  %v352_v3 = vmul.f32 -0.25, %v342_v60  ;;  %v278_v7 = vadd.f32 %v277_v61, %v276_v57 }
  0x6f   : > { %v345_v1 = vmul.f32 -0.75, %v343_v62  ;;  %v346_v6 = vmul.f32 -0.75, %v344_v63 }
  0x71   : > { %v353_v0 = vsel %vm349_vm14, %v351_v2, %v345_v1  ;;  %v354_v8 = vsel %vm350_vm15, %v352_v3, %v346_v6 }
  0x72   : > { %v355_v10 = vadd.f32 %v354_v8, %v353_v0 }
  0x74   : > { %v356_v4 = vadd.f32 %v355_v10, %v278_v7 }
  0x76   : > { %357 = vst [vmem:[%s200_s16] sm:$0xff] %v356_v4 }
  0x77   : > { %649 = shalt.err (!%p646_p0)
}
  0x78   : > { %491 = dma.vmem_to_hbm [thread:$0]  (%p759_p11), %s372_s17, 128, %s374_s29, %s359_s3  }
  0x79 PF: > { %s385_s23 = sand.u32 1, %s680_s9   ;;  %p953_p1 = scmp.ge.s32.totalorder %s692_s12, 2 }
  0x7a   : > { %s386_s4 = scalar_lea.sflag [#allocation4], %s385_s23 }
  0x7b   : > { %p501_p4 = pnand %p953_p1, %p763_p12 }
  0x7d   : > { %p502_p7 = pneg %p501_p4 }
  0x7f   : > { %675 = dma.done.wait (%p502_p7), %s386_s4, 128  }
  0x80   : > { %677 = vsyncadd (%p502_p7), %s386_s4, 4294967168  ;;  %p18_p5 = scmp.ge.s32.totalorder %s734_s15, 4   ;;  %s954_s9 = smov %s684_s10 }
  0x81   : > { %s955_s10 = smov %s688_s11  ;;  %s956_s11 = smov %s746_s18 }
  0x82   : > { %s957_s12 = smov %s734_s15  ;;  %20 = sbr.rel (!%p18_p5) target bundleno = 7 (0x7), region = 88 }
  0x87   :  { %392 = vsyncpa [#allocation3], 1 }
  0x88   :  { %394 = vsyncpa [#allocation3 + $0x1], 1 }
  0x89   :  { %395 = vsyncpa [#allocation6], 1 }
  0x8a   :  { %397 = vsyncpa [#allocation6 + $0x1], 1 }
  0x8b   :  { %398 = vsyncpa [#allocation4], 1 }
  0x8c   :  { %400 = vsyncpa [#allocation4 + $0x1], 1 }

</bundles_post_ra>
